<compile_context>
chip_gen: v5e
topology: v5e:2x2
jax: 0.10.0
libtpu: 0.0.40
codegen_flags: <defaults>
</compile_context>

<pallas_src>
import jax
import jax.numpy as jnp
from jax.experimental import pallas as pl
from jax.experimental.pallas import tpu as pltpu


def ffn_kernel(x_ref, w1_ref, b1_ref, wmid_ref, bmid_ref, w_out_ref, b_out_ref,
               o_ref):
    # Layer 1: Linear(input_dim, H) + ReLU.  bf16 operands, f32 accumulation.
    h = jnp.dot(x_ref[...], w1_ref[...], preferred_element_type=jnp.float32)
    h = jnp.maximum(h + b1_ref[...], 0.0)

    # Layers 2-6 (Linear(H, H/2) + 4x Linear(H/2, H/2); no nonlinearity between
    # them) are pre-folded in the wrapper into a single Linear(H, H/2).
    h = jnp.dot(h.astype(jnp.bfloat16), wmid_ref[...],
                preferred_element_type=jnp.float32)
    h = jnp.maximum(h + bmid_ref[...], 0.0)

    # Dropout(0.2) is the identity at inference time.
    # TODO(synk): training-mode dropout (pltpu.prng_random_bits mask) not emitted.

    # Output Linear(H/2, out_dim), lane-dense: contract (out_dim, H/2) with
    # (TILE_B, H/2) on the last axis -> (out_dim, TILE_B) output block.
    o = jax.lax.dot_general(
        w_out_ref[...], h.astype(jnp.bfloat16),
        dimension_numbers=(((1,), (1,)), ((), ())),
        preferred_element_type=jnp.float32)
    o_ref[...] = o + b_out_ref[...]


def feed_forward_network(x, params, *, tile_b=128):
    """x: (B, input_dim) float32.

    params: flat list [W1, b1, ..., W7, b7]; W stored (in, out) — i.e. transposed
    relative to nn.Linear's (out, in) — and b stored (1, out).
    tile_b: batch rows per grid step; must be a multiple of 128.  128 is fine for
    small batches; use 512-1024 for large batches on v6e/v7x.
    """
    (w1, b1, w2, b2, w3, b3, w4, b4, w5, b5, w6, b6, w7, b7) = params
    if tile_b % 128 != 0:
        raise ValueError("tile_b must be a multiple of 128")

    B, input_dim = x.shape
    hidden = w1.shape[1]
    h2 = w2.shape[1]
    out_dim = w7.shape[1]

    # Fold the five activation-free middle Linears into one affine map (f32).
    w_mid, b_mid = w2, b2
    for w, b in ((w3, b3), (w4, b4), (w5, b5), (w6, b6)):
        b_mid = b_mid @ w + b
        w_mid = w_mid @ w

    # bf16 matmul operands (f32 accumulation inside the kernel); biases stay f32.
    x_b = x.astype(jnp.bfloat16)
    w1_b = w1.astype(jnp.bfloat16)
    w_mid_b = w_mid.astype(jnp.bfloat16)
    w_out_b = w7.T.astype(jnp.bfloat16)                    # (out_dim, H/2)
    b1_f = b1.astype(jnp.float32)
    b_mid_f = b_mid.astype(jnp.float32)
    b_out_f = b7.reshape(out_dim, 1).astype(jnp.float32)   # (out_dim, 1)

    # Pad the batch to a multiple of the row tile; 1-D grid over row tiles.
    n_tiles = pl.cdiv(B, tile_b)
    b_pad = n_tiles * tile_b
    if b_pad != B:
        x_b = jnp.pad(x_b, ((0, b_pad - B), (0, 0)))

    out = pl.pallas_call(
        ffn_kernel,
        out_shape=jax.ShapeDtypeStruct((out_dim, b_pad), jnp.float32),
        grid=(n_tiles,),
        in_specs=[
            pl.BlockSpec((tile_b, input_dim), lambda i: (i, 0)),  # x: pipelined rows
            pl.BlockSpec((input_dim, hidden), lambda i: (0, 0)),  # weights: VMEM resident
            pl.BlockSpec((1, hidden), lambda i: (0, 0)),
            pl.BlockSpec((hidden, h2), lambda i: (0, 0)),
            pl.BlockSpec((1, h2), lambda i: (0, 0)),
            pl.BlockSpec((out_dim, h2), lambda i: (0, 0)),
            pl.BlockSpec((out_dim, 1), lambda i: (0, 0)),
        ],
        out_specs=pl.BlockSpec((out_dim, tile_b), lambda i: (0, i)),
        compiler_params=pltpu.CompilerParams(
            dimension_semantics=("parallel",),
            vmem_limit_bytes=32 << 20,
        ),
    )(x_b, w1_b, b1_f, w_mid_b, b_mid_f, w_out_b, b_out_f)

    # (out_dim, b_pad) -> drop padding rows, transpose back, torch.squeeze().
    return jnp.squeeze(out[:, :B].T)


def init_params(key, input_dim, hidden_dim, out_dim=1):
    """Deterministic demo weights.  W stored (in, out); b stored (1, out)."""
    h2 = hidden_dim // 2
    dims = [
        (input_dim, hidden_dim),
        (hidden_dim, h2),
        (h2, h2), (h2, h2), (h2, h2), (h2, h2),
        (h2, out_dim),
    ]
    params = []
    for i, (fan_in, fan_out) in enumerate(dims):
        kw, kb = jax.random.split(jax.random.fold_in(key, i))
        bound = 1.0 / float(jnp.sqrt(fan_in))
        params.append(jax.random.uniform(kw, (fan_in, fan_out), jnp.float32,
                                         -bound, bound))
        params.append(jax.random.uniform(kb, (1, fan_out), jnp.float32,
                                         -bound, bound))
    return params


if __name__ == "__main__":
    # Small shapes consistent with the module: (batch, input_dim) features in,
    # even hidden so hidden // 2 is exact.  Batch 200 exercises padding + a
    # multi-step (2-tile) grid.
    batch, input_dim, hidden, out_dim = 200, 128, 256, 1

    key = jax.random.PRNGKey(0)
    kx, kp = jax.random.split(key)
    x = jax.random.normal(kx, (batch, input_dim), dtype=jnp.float32)
    params = init_params(kp, input_dim, hidden, out_dim)

    y = feed_forward_network(x, params, tile_b=128)
    y = jax.block_until_ready(y)

    # Pure-JAX f32 reference of the original (unfolded) module forward pass.
    (w1, b1, w2, b2, w3, b3, w4, b4, w5, b5, w6, b6, w7, b7) = params
    h = jnp.maximum(x @ w1 + b1, 0.0)
    h = h @ w2 + b2
    h = h @ w3 + b3
    h = h @ w4 + b4
    h = h @ w5 + b5
    h = h @ w6 + b6
    h = jnp.maximum(h, 0.0)              # Dropout(0.2) is identity at inference
    ref = jnp.squeeze(h @ w7 + b7)

    assert y.shape == (batch,), y.shape
    # bf16 matmul operands + layer folding -> looser-than-f32 tolerance.
    assert jnp.allclose(y, ref, atol=2e-2, rtol=2e-2), \
        float(jnp.max(jnp.abs(y - ref)))
    print("KERNEL_OK")
</pallas_src>

<mosaic_0001>
module attributes {stable_mosaic.version = 11 : i64} {
  func.func @ffn_kernel(%arg0: i32, %arg1: memref<128x128xbf16, #tpu.memory_space<vmem>>, %arg2: memref<128x256xbf16, #tpu.memory_space<vmem>>, %arg3: memref<1x256xf32, #tpu.memory_space<vmem>>, %arg4: memref<256x128xbf16, #tpu.memory_space<vmem>>, %arg5: memref<1x128xf32, #tpu.memory_space<vmem>>, %arg6: memref<1x128xbf16, #tpu.memory_space<vmem>>, %arg7: memref<1x1xf32, #tpu.memory_space<vmem>>, %arg8: memref<1x128xf32, #tpu.memory_space<vmem>>) attributes {dimension_semantics = [#tpu.dimension_semantics<parallel>], iteration_bounds = array<i64: 2>, scalar_prefetch = 0 : i64, scratch_operands = 0 : i64, tpu.core_type = #tpu.core_type<tc>, window_params = [{transform_indices = @transform_0, window_bounds = array<i64: 128, 128>}, {pipeline_mode = #tpu.pipeline_mode<synchronous>, transform_indices = @transform_1, window_bounds = array<i64: 128, 256>}, {pipeline_mode = #tpu.pipeline_mode<synchronous>, transform_indices = @transform_2, window_bounds = array<i64: 1, 256>}, {pipeline_mode = #tpu.pipeline_mode<synchronous>, transform_indices = @transform_3, window_bounds = array<i64: 256, 128>}, {pipeline_mode = #tpu.pipeline_mode<synchronous>, transform_indices = @transform_4, window_bounds = array<i64: 1, 128>}, {pipeline_mode = #tpu.pipeline_mode<synchronous>, transform_indices = @transform_5, window_bounds = array<i64: 1, 128>}, {pipeline_mode = #tpu.pipeline_mode<synchronous>, transform_indices = @transform_6, window_bounds = array<i64: 1, 1>}, {transform_indices = @transform_7, window_bounds = array<i64: 1, 128>}]} {
    %c0 = arith.constant 0 : index
    %c0_0 = arith.constant 0 : index
    %0 = vector.load %arg1[%c0, %c0_0] : memref<128x128xbf16, #tpu.memory_space<vmem>>, vector<128x128xbf16>
    %c0_1 = arith.constant 0 : index
    %c0_2 = arith.constant 0 : index
    %1 = vector.load %arg2[%c0_1, %c0_2] : memref<128x256xbf16, #tpu.memory_space<vmem>>, vector<128x256xbf16>
    %cst = arith.constant dense<0.000000e+00> : vector<128x256xf32>
    %2 = tpu.matmul %0, %1, %cst {dimension_numbers = #tpu.dot_dimension_numbers<[1], [0], [0], [1], [0, 0, 1, 1], [], []>} : vector<128x128xbf16>, vector<128x256xbf16>, vector<128x256xf32> -> vector<128x256xf32>
    %c0_3 = arith.constant 0 : index
    %c0_4 = arith.constant 0 : index
    %3 = vector.load %arg3[%c0_3, %c0_4] : memref<1x256xf32, #tpu.memory_space<vmem>>, vector<1x256xf32>
    %4 = vector.broadcast %3 : vector<1x256xf32> to vector<128x256xf32>
    %5 = arith.addf %2, %4 : vector<128x256xf32>
    %cst_5 = arith.constant 0.000000e+00 : f32
    %6 = vector.broadcast %cst_5 : f32 to vector<128x256xf32>
    %7 = arith.maximumf %5, %6 : vector<128x256xf32>
    %8 = arith.truncf %7 : vector<128x256xf32> to vector<128x256xbf16>
    %c0_6 = arith.constant 0 : index
    %c0_7 = arith.constant 0 : index
    %9 = vector.load %arg4[%c0_6, %c0_7] : memref<256x128xbf16, #tpu.memory_space<vmem>>, vector<256x128xbf16>
    %cst_8 = arith.constant dense<0.000000e+00> : vector<128x128xf32>
    %10 = tpu.matmul %8, %9, %cst_8 {dimension_numbers = #tpu.dot_dimension_numbers<[1], [0], [0], [1], [0, 0, 1, 1], [], []>} : vector<128x256xbf16>, vector<256x128xbf16>, vector<128x128xf32> -> vector<128x128xf32>
    %c0_9 = arith.constant 0 : index
    %c0_10 = arith.constant 0 : index
    %11 = vector.load %arg5[%c0_9, %c0_10] : memref<1x128xf32, #tpu.memory_space<vmem>>, vector<1x128xf32>
    %12 = vector.broadcast %11 : vector<1x128xf32> to vector<128x128xf32>
    %13 = arith.addf %10, %12 : vector<128x128xf32>
    %cst_11 = arith.constant 0.000000e+00 : f32
    %14 = vector.broadcast %cst_11 : f32 to vector<128x128xf32>
    %15 = arith.maximumf %13, %14 : vector<128x128xf32>
    %c0_12 = arith.constant 0 : index
    %c0_13 = arith.constant 0 : index
    %16 = vector.load %arg6[%c0_12, %c0_13] : memref<1x128xbf16, #tpu.memory_space<vmem>>, vector<1x128xbf16>
    %17 = arith.truncf %15 : vector<128x128xf32> to vector<128x128xbf16>
    %cst_14 = arith.constant dense<0.000000e+00> : vector<1x128xf32>
    %18 = tpu.matmul %16, %17, %cst_14 {dimension_numbers = #tpu.dot_dimension_numbers<[1], [1], [0], [0], [0, 0, 1, 0], [], []>} : vector<1x128xbf16>, vector<128x128xbf16>, vector<1x128xf32> -> vector<1x128xf32>
    %c0_15 = arith.constant 0 : index
    %c0_16 = arith.constant 0 : index
    %19 = vector.load %arg7[%c0_15, %c0_16] : memref<1x1xf32, #tpu.memory_space<vmem>>, vector<1x1xf32>
    %20 = vector.broadcast %19 : vector<1x1xf32> to vector<1x128xf32>
    %21 = arith.addf %18, %20 : vector<1x128xf32>
    %c0_17 = arith.constant 0 : index
    %c0_18 = arith.constant 0 : index
    %22 = vector.load %arg8[%c0_17, %c0_18] : memref<1x128xf32, #tpu.memory_space<vmem>>, vector<1x128xf32>
    tpu.vector_store %arg8[%c0_17, %c0_18], %21 {strides = array<i32>} : memref<1x128xf32, #tpu.memory_space<vmem>>, vector<1x128xf32>,
    return
  }
  func.func @transform_0(%arg0: i32) -> (i32, i32) {
    %c0_i32 = arith.constant 0 : i32
    %c0_i32_0 = arith.constant 0 : i32
    return %arg0, %c0_i32 : i32, i32
  }
  func.func @transform_1(%arg0: i32) -> (i32, i32) {
    %c0_i32 = arith.constant 0 : i32
    %c0_i32_0 = arith.constant 0 : i32
    %c0_i32_1 = arith.constant 0 : i32
    return %c0_i32, %c0_i32_0 : i32, i32
  }
  func.func @transform_2(%arg0: i32) -> (i32, i32) {
    %c0_i32 = arith.constant 0 : i32
    %c0_i32_0 = arith.constant 0 : i32
    %c0_i32_1 = arith.constant 0 : i32
    return %c0_i32, %c0_i32_0 : i32, i32
  }
  func.func @transform_3(%arg0: i32) -> (i32, i32) {
    %c0_i32 = arith.constant 0 : i32
    %c0_i32_0 = arith.constant 0 : i32
    %c0_i32_1 = arith.constant 0 : i32
    return %c0_i32, %c0_i32_0 : i32, i32
  }
  func.func @transform_4(%arg0: i32) -> (i32, i32) {
    %c0_i32 = arith.constant 0 : i32
    %c0_i32_0 = arith.constant 0 : i32
    %c0_i32_1 = arith.constant 0 : i32
    return %c0_i32, %c0_i32_0 : i32, i32
  }
  func.func @transform_5(%arg0: i32) -> (i32, i32) {
    %c0_i32 = arith.constant 0 : i32
    %c0_i32_0 = arith.constant 0 : i32
    %c0_i32_1 = arith.constant 0 : i32
    return %c0_i32, %c0_i32_0 : i32, i32
  }
  func.func @transform_6(%arg0: i32) -> (i32, i32) {
    %c0_i32 = arith.constant 0 : i32
    %c0_i32_0 = arith.constant 0 : i32
    %c0_i32_1 = arith.constant 0 : i32
    return %c0_i32, %c0_i32_0 : i32, i32
  }
  func.func @transform_7(%arg0: i32) -> (i32, i32) {
    %c0_i32 = arith.constant 0 : i32
    %c0_i32_0 = arith.constant 0 : i32
    return %c0_i32, %arg0 : i32, i32
  }
}

</mosaic_0001>

<bundles_post_ra>
// kernel: tpu_custom_call.1
= control target key start
LH: loop header
LB: loop body
LE: loop exit
PB: predicated region body
PF: predicated region fallthrough
CT: control target
= control target key end

     0   :  { %s1751_s0 = inlined_call_operand.hbm [shape: bf16[256,128], index: 0, kind: input, shape index: {}]   ;;  %s1752_s1 = inlined_call_operand.hbm [shape: bf16[128,256], index: 1, kind: input, shape index: {}]   ;;  %s1753_s2 = inlined_call_operand.vmem [shape: f32[1,256], index: 2, kind: input, shape index: {}]   ;;  %s1754_s3 = inlined_call_operand.hbm [shape: bf16[256,128], index: 3, kind: input, shape index: {}]   ;;  %s1755_s4 = inlined_call_operand.vmem [shape: f32[1,128], index: 4, kind: input, shape index: {}]   ;;  %s1756_s5 = inlined_call_operand.vmem [shape: bf16[1,128], index: 5, kind: input, shape index: {}]   ;;  %s1757_s6 = inlined_call_operand.<no memory space> [shape: f32[1,1], index: 6, kind: input, shape index: {}]   ;;  %s1758_s7 = inlined_call_operand.hbm [shape: f32[1,256], index: 7, kind: output, shape index: {}]  }
   0x1   :  { %v12_v0 = vstv %s1757_s6 }
   0x2   :  { %13 = vst [vmem:[#allocation2] sm:$0x1] %v12_v0 }
   0x3   :  { %14 = vsyncpa [#allocation4], 0 }
   0x4   :  { %16 = vsyncpa [#allocation4 + $0x1], 0 }
   0x5   :  { %17 = vsyncpa [#allocation7], 0 }
   0x6   :  { %18 = vsyncpa [#allocation5], 0 }
   0x7   :  { %20 = vsyncpa [#allocation5 + $0x1], 0  ;;  %s1521_s26 = smov 0   ;;  %s1523_s27 = smov 0  }
   0x8   :  { %s1525_s28 = smov 0   ;;  %s1527_s29 = smov 0  }
   0x9 LB: > { %s1542_s6 = sadd.s32 4294967295, %s1469_s29   ;;  %s1020_s30 = sadd.s32 4294967294, %s1469_s29   ;;  %s1469_s29 = sphi %s1527_s29, %s1772_s29   ;;  %s1465_s28 = sphi %s1525_s28, %s1771_s28   ;;  %s1461_s27 = sphi %s1523_s27, %s1770_s27   ;;  %s1457_s26 = sphi %s1521_s26, %s1769_s26  }
   0xa   : > { %p46_p0 = scmp.ne.s32.totalorder %s1461_s27, %s1457_s26  ;;  %p47_p1 = scmp.eq.s32.totalorder %s1542_s6, 0 }
   0xb   : > { %p196_p2 = scmp.eq.s32.totalorder %s1542_s6, 1  ;;  %p202_p3 = scmp.eq.s32.totalorder %s1020_s30, 1 }
   0xc   : > { %p1551_p4 = por %p47_p1, %p46_p0  ;;  %p1021_p5 = scmp.ge.s32.totalorder %s1469_s29, 1 }
   0xd   : > { %p1556_p6 = por %p202_p3, %p46_p0  ;;  %p209_p7 = scmp.lt.s32.totalorder %s1469_s29, 3 }
   0xe   : > { %s220_s12 = sshll.u32 %s1752_s1, 4  ;;  %s1471_s14 = smov [#allocation6]   ;;  %s221_s12 = int_to_ptr.hbm [resolvable:$true] %s220_s12 }
   0xf   : > { %p1564_p8 = pnand %p1021_p5, %p209_p7  ;;  %s222_s15 = sshll.u32 %s1471_s14, 4  ;;  %s223_s15 = int_to_ptr.vmem [resolvable:$true] %s222_s15 }
  0x10   : > { %s237_s18 = sshll.u32 %s1754_s3, 4  ;;  %s1472_s19 = smov 128   ;;  %s238_s18 = int_to_ptr.hbm [resolvable:$true] %s237_s18 }
  0x11   : > { %p1247_p9 = pneg %p1564_p8  ;;  %s1473_s20 = smov 8  }
  0x12   : > { %s1474_s21 = smov [#allocation8]   ;;  %s1759_s23 = smov 64  }
  0x13   : > { %p1248_p10 = pnand %p1247_p9, %p47_p1  ;;  %s239_s22 = sshll.u32 %s1474_s21, 4  ;;  %s240_s22 = int_to_ptr.vmem [resolvable:$true] %s239_s22 }
  0x14   : > { %s1760_s24 = smov 4   ;;  %s1580_s25 = sadd.s32 1, %s1469_s29  }
  0x15   : > { %1250 = dma.hbm_to_vmem [thread:$0]  (!%p1248_p10), %s221_s12, 2048, %s223_s15, [#allocation7], %s1472_s19, %s1472_s19, %s1473_s20  }
  0x16   : > { %1253 = dma.hbm_to_vmem [thread:$0]  (!%p1248_p10), %s238_s18, 2048, %s240_s22, [#allocation7], %s1759_s23, %s1759_s23, %s1760_s24  }
  0x17   : > { %s30_s30 = ssub.s32 %s1469_s29, %s1580_s25  ;;  %s33_s10 = sadd.s32 1, %s1465_s28 }
  0x18   : > { %p31_p12 = scmp.eq.s32.totalorder %s30_s30, 0  ;;  %p40_p13 = scmp.ne.s32.totalorder %s1465_s28, %s1461_s27 }
  0x19   : > { %p41_p0 = scmp.eq.s32.totalorder %s1469_s29, 0  ;;  %p1264_p7 = scmp.lt.s32.totalorder %s1469_s29, 2 }
  0x1a   : > { %s1589_s11 = scalar_select %p31_p12, %s1465_s28, %s33_s10  }
  0x1b   : > { %p42_p3 = por %p41_p0, %p40_p13  ;;  %p1593_p5 = por %p196_p2, %p40_p13 }
  0x1c   : > { %s262_s14 = sand.u32 1, %s1465_s28   ;;  %s1194_s16 = sshll.u32 %s1469_s29, 6 }
  0x1d   : > { %s1025_s15 = sshll.u32 %s262_s14, 6  ;;  %s271_s19 = scalar_lea.hbm %s1751_s0, %s1194_s16 }
  0x1e   : > { %s266_s20 = scalar_lea.vmem [#allocation3], %s1025_s15  ;;  %s272_s22 = sshll.u32 %s271_s19, 4  ;;  %s273_s22 = int_to_ptr.hbm [resolvable:$true] %s272_s22 }
  0x1f   : > { %s274_s21 = sshll.u32 %s266_s20, 4  ;;  %p1603_p9 = pnand %p1264_p7, %p42_p3  ;;  %s275_s21 = int_to_ptr.vmem [resolvable:$true] %s274_s21 }
  0x20   : > { %s263_s10 = scalar_lea.sflag [#allocation4], %s262_s14  ;;  %s1369_s23 = sshra.s32 %s273_s22, 4  ;;  %s1370_s23 = int_to_ptr.hbm [resolvable:$true] %s1369_s23 }
  0x21   : > { %s1371_s24 = scalar_lea.hbm %s1370_s23, 64  ;;  %p1373_p10 = pneg %p1603_p9 }
  0x22   : > { %p1372_p2 = scmp.ne.s32.totalorder %s1370_s23, %s1371_s24  ;;  %s1376_s17 = scalar_lea.hbm %s1751_s0, 128 }
  0x23   : > { %p1377_p0 = scmp.lt.s32.totalorder %s1370_s23, %s1751_s0  ;;  %p1378_p3 = scmp.lt.s32.totalorder %s1376_s17, %s1371_s24 }
  0x24   : > { %p1374_p12 = pnand %p1373_p10, %p1372_p2 }
  0x25   : > { %p1379_p7 = por %p1378_p3, %p1377_p0 }
  0x26   : > { %p1375_p13 = pneg %p1374_p12 }
  0x28   : > { %p1380_p11 = pnand %p1379_p7, %p1375_p13 }
  0x2a   : > { %1383 = shalt.err (!%p1380_p11)
}
  0x2b   : > { %s1766_s14 = smov 4   ;;  %s1767_s20 = smov 64  }
  0x2c   : > { %1257 = dma.hbm_to_vmem [thread:$0]  (!%p1603_p9), %s273_s22, 1024, %s275_s21, %s263_s10, %s1767_s20, %s1767_s20, %s1766_s14  }
  0x2d   : > { %286 = sbr.rel (%p1564_p8) target bundleno = 684 (0x2ac), region = 48  ;;  %s1623_s16 = sand.u32 (!%p1564_p8), 1, %s1461_s27  }
  0x2e   : > { %s1029_s23 = sshll.u32 (!%p1564_p8), %s1623_s16, 6  ;;  %s289_s24 = scalar_lea.sflag (!%p1564_p8), [#allocation4], %s1623_s16 }
  0x2f   : > { %s1627_s15 = scalar_lea.vmem (!%p1564_p8), [#allocation3], %s1029_s23 }
  0x32   : > { %1444 = dma.done.wait (%p1551_p4), %s289_s24, 1024  }
  0x33   : > { %1446 = vsyncadd (%p1551_p4), %s289_s24, 4294966272 }
  0x34   : > { %1448 = dma.done.wait (%p47_p1), [#allocation7], 4096  }
  0x35   : > { %1450 = vsyncadd (%p47_p1), [#allocation7], 4294963200  ;;  %v1122_v1 = vld [vmem:[#allocation6 + $0x70] sm:$0xf]  ;;  %v1218_v2 = vld [vmem:[#allocation6 + $0x74] sm:$0xf0]  ;;  %s931_s19 = scalar_lea.hbm %s1758_s7, %s1542_s6 }
  0x36   : > { %v1217_v3 = vld [vmem:[#allocation6 + $0x74] sm:$0xf]  ;;  %v1123_v4 = vor.u32 %v1218_v2, %v1122_v1  ;;  %v1124_v5 = vld [vmem:[#allocation6 + $0x78] sm:$0xf0]  ;;  %v1114_v6 = vld [vmem:[#allocation6 + $0x60] sm:$0xf] }
  0x37   : > { %v1216_v7 = vld [vmem:[#allocation6 + $0x64] sm:$0xf0]  ;;  %v1127_v8 = vor.u32 %v1217_v3, %v1124_v5  ;;  %v1215_v9 = vld [vmem:[#allocation6 + $0x64] sm:$0xf]  ;;  %v1116_v10 = vld [vmem:[#allocation6 + $0x68] sm:$0xf0] }
  0x38   : > { %500 = vmatpush.bf16.msra.mxu0 %v1123_v4  ;;  %v1115_v11 = vor.u32 %v1216_v7, %v1114_v6  ;;  %v1119_v12 = vor.u32 %v1215_v9, %v1116_v10  ;;  %v1106_v13 = vld [vmem:[#allocation6 + $0x50] sm:$0xf]  ;;  %v1214_v14 = vld [vmem:[#allocation6 + $0x54] sm:$0xf0]  ;;  %v1213_v15 = vld [vmem:[#allocation6 + $0x54] sm:$0xf] }
  0x39   : > { %549 = vmatpush.bf16.msra.mxu1 %v1127_v8  ;;  %v1108_v16 = vld [vmem:[#allocation6 + $0x58] sm:$0xf0]  ;;  %v1107_v17 = vor.u32 %v1214_v14, %v1106_v13  ;;  %v1098_v19 = vld [vmem:[#allocation6 + $0x40] sm:$0xf]  ;;  %v1212_v20 = vld [vmem:[#allocation6 + $0x44] sm:$0xf0] }
  0x3a   : > { %v1111_v18 = vor.u32 %v1213_v15, %v1108_v16  ;;  %v1211_v21 = vld [vmem:[#allocation6 + $0x44] sm:$0xf]  ;;  %v1100_v22 = vld [vmem:[#allocation6 + $0x48] sm:$0xf0]  ;;  %v1099_v23 = vor.u32 %v1212_v20, %v1098_v19  ;;  %v1090_v25 = vld [vmem:[#allocation6 + $0x30] sm:$0xf] }
  0x3b   : > { %v1103_v24 = vor.u32 %v1211_v21, %v1100_v22  ;;  %v1210_v26 = vld [vmem:[#allocation6 + $0x34] sm:$0xf0]  ;;  %v1209_v27 = vld [vmem:[#allocation6 + $0x34] sm:$0xf]  ;;  %v1092_v28 = vld [vmem:[#allocation6 + $0x38] sm:$0xf0] }
  0x3c   : > { %501 = vmatpush.bf16.msra.mxu0 %v1115_v11  ;;  %v1091_v29 = vor.u32 %v1210_v26, %v1090_v25  ;;  %v1095_v30 = vor.u32 %v1209_v27, %v1092_v28  ;;  %v1082_v31 = vld [vmem:[#allocation6 + $0x20] sm:$0xf]  ;;  %v1208_v32 = vld [vmem:[#allocation6 + $0x24] sm:$0xf0]  ;;  %v1207_v33 = vld [vmem:[#allocation6 + $0x24] sm:$0xf] }
  0x3d   : > { %550 = vmatpush.bf16.msra.mxu1 %v1119_v12  ;;  %v1084_v34 = vld [vmem:[#allocation6 + $0x28] sm:$0xf0]  ;;  %v1083_v35 = vor.u32 %v1208_v32, %v1082_v31  ;;  %v1074_v37 = vld [vmem:[#allocation6 + $0x10] sm:$0xf]  ;;  %v1206_v38 = vld [vmem:[#allocation6 + $0x14] sm:$0xf0] }
  0x3e   : > { %v1087_v36 = vor.u32 %v1207_v33, %v1084_v34  ;;  %v1205_v39 = vld [vmem:[#allocation6 + $0x14] sm:$0xf]  ;;  %v1076_v40 = vld [vmem:[#allocation6 + $0x18] sm:$0xf0]  ;;  %v1075_v41 = vor.u32 %v1206_v38, %v1074_v37  ;;  %v1066_v43 = vld [vmem:[#allocation6] sm:$0xf] }
  0x3f   : > { %v1079_v42 = vor.u32 %v1205_v39, %v1076_v40  ;;  %v1204_v44 = vld [vmem:[#allocation6 + $0x4] sm:$0xf0]  ;;  %v1203_v45 = vld [vmem:[#allocation6 + $0x4] sm:$0xf]  ;;  %v1068_v46 = vld [vmem:[#allocation6 + $0x8] sm:$0xf0] }
  0x40   : > { %502 = vmatpush.bf16.msra.mxu0 %v1107_v17  ;;  %v1067_v47 = vor.u32 %v1204_v44, %v1066_v43  ;;  %v1071_v48 = vor.u32 %v1203_v45, %v1068_v46  ;;  %v1195_v49 = vld [vmem:[%s1627_s15] sm:$0xff]  ;;  %v1196_v50 = vld [vmem:[%s1627_s15 + $0x8] sm:$0xff]  ;;  %v1197_v51 = vld [vmem:[%s1627_s15 + $0x10] sm:$0xff]  ;;  %s332_s14 = scalar_lea.vmem [#allocation9], %s1623_s16  ;;  %s935_s23 = sshll.u32 %s931_s19, 4  ;;  %s936_s23 = int_to_ptr.hbm [resolvable:$true] %s935_s23 }
  0x41   : > { %551 = vmatpush.bf16.msra.mxu1 %v1111_v18  ;;  %v1198_v52 = vld [vmem:[%s1627_s15 + $0x18] sm:$0xff]  ;;  %v1199_v53 = vld [vmem:[%s1627_s15 + $0x20] sm:$0xff]  ;;  %v1200_v56 = vld [vmem:[%s1627_s15 + $0x28] sm:$0xff]  ;;  %s933_s20 = sshll.u32 %s332_s14, 4  ;;  %s923_s24 = scalar_lea.sflag [#allocation5], %s1623_s16  ;;  %s934_s20 = int_to_ptr.vmem [resolvable:$true] %s933_s20 }
  0x42   : > { %v1226_v54 = vld [vmem:[#allocation8 + $0x38] sm:$0xff]  ;;  %v1225_v57 = vld [vmem:[#allocation8 + $0x30] sm:$0xff]  ;;  %v1224_v59 = vld [vmem:[#allocation8 + $0x28] sm:$0xff]  ;;  %s1419_s6 = scalar_lea.hbm %s1758_s7, 2 }
  0x43   : > { %v1234_v55 = vld [vmem:[#allocation8 + $0x78] sm:$0xff]  ;;  %778 = vmatpush.bf16.msra.mxu2 %v1226_v54  ;;  %v1233_v58 = vld [vmem:[#allocation8 + $0x70] sm:$0xff]  ;;  %v1232_v60 = vld [vmem:[#allocation8 + $0x68] sm:$0xff] }
  0x44   : > { %503 = vmatpush.bf16.msra.mxu0 %v1099_v23  ;;  %827 = vmatpush.bf16.msra.mxu3 %v1234_v55  ;;  %v1223_v61 = vld [vmem:[#allocation8 + $0x20] sm:$0xff]  ;;  %v1201_v63 = vld [vmem:[%s1627_s15 + $0x30] sm:$0xff]  ;;  %v1222_v0 = vld [vmem:[#allocation8 + $0x18] sm:$0xff] }
  0x45   : > { %552 = vmatpush.bf16.msra.mxu1 %v1103_v24  ;;  %v1231_v62 = vld [vmem:[#allocation8 + $0x60] sm:$0xff]  ;;  %v1230_v1 = vld [vmem:[#allocation8 + $0x58] sm:$0xff]  ;;  %v1221_v2 = vld [vmem:[#allocation8 + $0x10] sm:$0xff] }
  0x46   : > { %v1229_v3 = vld [vmem:[#allocation8 + $0x50] sm:$0xff]  ;;  %v1220_v4 = vld [vmem:[#allocation8 + $0x8] sm:$0xff]  ;;  %v1219_v6 = vld [vmem:[#allocation8] sm:$0xff] }
  0x47   : > { %779 = vmatpush.bf16.msra.mxu2 %v1225_v57  ;;  %v1228_v5 = vld [vmem:[#allocation8 + $0x48] sm:$0xff]  ;;  %v1227_v7 = vld [vmem:[#allocation8 + $0x40] sm:$0xff]  ;;  %v1202_v8 = vld [vmem:[%s1627_s15 + $0x38] sm:$0xff]  ;;  %s1413_s15 = sshra.s32 %s936_s23, 4  ;;  %s1414_s15 = int_to_ptr.hbm [resolvable:$true] %s1413_s15 }
  0x48   : > { %504 = vmatpush.bf16.msra.mxu0 %v1091_v29  ;;  %828 = vmatpush.bf16.msra.mxu3 %v1233_v58  ;;  %v366_v9 = vld [vmem:[%s1753_s2] sm:$0x3]  ;;  %s1415_s8 = scalar_lea.hbm %s1414_s15, 1  ;;  %p1420_p11 = scmp.lt.s32.totalorder %s1414_s15, %s1758_s7 }
  0x49   : > { %553 = vmatpush.bf16.msra.mxu1 %v1095_v30  ;;  %v1648_v12 = vperm.slane %v366_v9, 0  ;;  %v1650_v13 = vperm.slane %v366_v9, 1  ;;  %p1416_p1 = scmp.ne.s32.totalorder %s1414_s15, %s1415_s8  ;;  %p1421_p9 = scmp.lt.s32.totalorder %s1419_s6, %s1415_s8 }
  0x4b   : > { %780 = vmatpush.bf16.msra.mxu2 %v1224_v59  ;;  %p1417_p4 = pnand %p1416_p1, %p1593_p5  ;;  %p1422_p2 = por %p1421_p9, %p1420_p11 }
  0x4c   : > { %505 = vmatpush.bf16.msra.mxu0 %v1083_v35  ;;  %829 = vmatpush.bf16.msra.mxu3 %v1232_v60 }
  0x4d   : > { %554 = vmatpush.bf16.msra.mxu1 %v1087_v36  ;;  %p1418_p8 = pneg %p1417_p4 }
  0x4f   : > { %781 = vmatpush.bf16.msra.mxu2 %v1223_v61  ;;  %p1423_p10 = pnand %p1422_p2, %p1418_p8 }
  0x50   : > { %506 = vmatpush.bf16.msra.mxu0 %v1075_v41  ;;  %830 = vmatpush.bf16.msra.mxu3 %v1231_v62 }
  0x51   : > { %555 = vmatpush.bf16.msra.mxu1 %v1079_v42 }
  0x53   : > { %782 = vmatpush.bf16.msra.mxu2 %v1222_v0 }
  0x54   : > { %507 = vmatpush.bf16.msra.mxu0 %v1067_v47  ;;  %831 = vmatpush.bf16.msra.mxu3 %v1230_v1 }
  0x55   : > { %556 = vmatpush.bf16.msra.mxu1 %v1071_v48 }
  0x57   : > { %508 = vmatmul.bf16.vlgmr.msra.gmra.mxu0 %v1195_v49  ;;  %783 = vmatpush.bf16.msra.mxu2 %v1221_v2 }
  0x58   : > { %557 = vmatmul.bf16.vlgmr.msra.gmra.mxu1 %v1195_v49  ;;  %832 = vmatpush.bf16.msra.mxu3 %v1229_v3 }
  0x5b   : > { %784 = vmatpush.bf16.msra.mxu2 %v1220_v4 }
  0x5c   : > { %833 = vmatpush.bf16.msra.mxu3 %v1228_v5 }
  0x5f   : > { %785 = vmatpush.bf16.msra.mxu2 %v1219_v6 }
  0x60   : > { %834 = vmatpush.bf16.msra.mxu3 %v1227_v7 }
  0x67   : > { %513 = vmatmul.bf16.gmra.mxu0 %v1196_v50 }
  0x68   : > { %562 = vmatmul.bf16.gmra.mxu1 %v1196_v50 }
  0x77   : > { %518 = vmatmul.bf16.gmra.mxu0 %v1197_v51 }
  0x78   : > { %567 = vmatmul.bf16.gmra.mxu1 %v1197_v51 }
  0x87   : > { %523 = vmatmul.bf16.gmra.mxu0 %v1198_v52 }
  0x88   : > { %572 = vmatmul.bf16.gmra.mxu1 %v1198_v52 }
  0x97   : > { %528 = vmatmul.bf16.gmra.mxu0 %v1199_v53 }
  0x98   : > { %577 = vmatmul.bf16.gmra.mxu1 %v1199_v53 }
  0xa7   : > { %533 = vmatmul.bf16.gmra.mxu0 %v1200_v56 }
  0xa8   : > { %582 = vmatmul.bf16.gmra.mxu1 %v1200_v56 }
  0xb7   : > { %538 = vmatmul.bf16.gmra.mxu0 %v1201_v63 }
  0xb8   : > { %587 = vmatmul.bf16.gmra.mxu1 %v1201_v63 }
  0xc7   : > { %543 = vmatmul.bf16.gmra.mxu0 %v1202_v8 }
  0xc8   : > { %592 = vmatmul.bf16.gmra.mxu1 %v1202_v8 }
  0xd4   : > { %v509_v10 = vpop.f32.mrf.mxu0 }
  0xd5   : > { %v558_v11 = vpop.f32.mrf.mxu1  ;;  %v510_v14 = vadd.f32 %v509_v10, %v1648_v12 }
  0xd6   : > { %v559_v15 = vadd.f32 %v558_v11, %v1650_v13 }
  0xd7   : > { %v598_v20 = vmax.f32 %v510_v14, 0.0 }
  0xd8   : > { %v599_v22 = vmax.f32 %v559_v15, 0.0 }
  0xdc   : > { %v511_v16 = vpop.f32.mrf.mxu0 }
  0xdd   : > { %v512_v17 = vadd.f32 %v511_v16, %v1648_v12  ;;  %v560_v18 = vpop.f32.mrf.mxu1 }
  0xde   : > { %v561_v19 = vadd.f32 %v560_v18, %v1650_v13 }
  0xdf   : > { %v600_v21 = vmax.f32 %v512_v17, 0.0 }
  0xe0   : > { %v601_v23 = vmax.f32 %v561_v19, 0.0 }
  0xe1   : > { %v630_v24 = vpack.c.bf16 %v600_v21, %v598_v20 }
  0xe2   : > { %v631_v25 = vpack.c.bf16 %v601_v23, %v599_v22 }
  0xe3   : > { %786 = vmatmul.bf16.vlgmr.msra.gmra.mxu2 %v630_v24 }
  0xe4   : > { %835 = vmatmul.bf16.vlgmr.msra.gmra.mxu3 %v631_v25  ;;  %v514_v26 = vpop.f32.mrf.mxu0 }
  0xe5   : > { %v563_v27 = vpop.f32.mrf.mxu1  ;;  %v515_v28 = vadd.f32 %v514_v26, %v1648_v12 }
  0xe6   : > { %v564_v29 = vadd.f32 %v563_v27, %v1650_v13 }
  0xe7   : > { %v602_v34 = vmax.f32 %v515_v28, 0.0 }
  0xe8   : > { %v603_v36 = vmax.f32 %v564_v29, 0.0 }
  0xec   : > { %v516_v30 = vpop.f32.mrf.mxu0 }
  0xed   : > { %v517_v31 = vadd.f32 %v516_v30, %v1648_v12  ;;  %v565_v32 = vpop.f32.mrf.mxu1 }
  0xee   : > { %v566_v33 = vadd.f32 %v565_v32, %v1650_v13 }
  0xef   : > { %v604_v35 = vmax.f32 %v517_v31, 0.0 }
  0xf0   : > { %v605_v37 = vmax.f32 %v566_v33, 0.0 }
  0xf1   : > { %v632_v38 = vpack.c.bf16 %v604_v35, %v602_v34 }
  0xf2   : > { %v633_v39 = vpack.c.bf16 %v605_v37, %v603_v36 }
  0xf3   : > { %791 = vmatmul.bf16.gmra.mxu2 %v632_v38 }
  0xf4   : > { %840 = vmatmul.bf16.gmra.mxu3 %v633_v39  ;;  %v519_v40 = vpop.f32.mrf.mxu0 }
  0xf5   : > { %v568_v41 = vpop.f32.mrf.mxu1  ;;  %v520_v42 = vadd.f32 %v519_v40, %v1648_v12 }
  0xf6   : > { %v569_v43 = vadd.f32 %v568_v41, %v1650_v13 }
  0xf7   : > { %v606_v48 = vmax.f32 %v520_v42, 0.0 }
  0xf8   : > { %v607_v50 = vmax.f32 %v569_v43, 0.0 }
  0xfc   : > { %v521_v44 = vpop.f32.mrf.mxu0 }
  0xfd   : > { %v522_v45 = vadd.f32 %v521_v44, %v1648_v12  ;;  %v570_v46 = vpop.f32.mrf.mxu1 }
  0xfe   : > { %v571_v47 = vadd.f32 %v570_v46, %v1650_v13 }
  0xff   : > { %v608_v49 = vmax.f32 %v522_v45, 0.0 }
 0x100   : > { %v609_v51 = vmax.f32 %v571_v47, 0.0 }
 0x101   : > { %v634_v52 = vpack.c.bf16 %v608_v49, %v606_v48 }
 0x102   : > { %v635_v53 = vpack.c.bf16 %v609_v51, %v607_v50 }
 0x103   : > { %796 = vmatmul.bf16.gmra.mxu2 %v634_v52 }
 0x104   : > { %845 = vmatmul.bf16.gmra.mxu3 %v635_v53  ;;  %v524_v54 = vpop.f32.mrf.mxu0 }
 0x105   : > { %v573_v55 = vpop.f32.mrf.mxu1  ;;  %v525_v56 = vadd.f32 %v524_v54, %v1648_v12 }
 0x106   : > { %v574_v57 = vadd.f32 %v573_v55, %v1650_v13 }
 0x107   : > { %v610_v62 = vmax.f32 %v525_v56, 0.0 }
 0x108   : > { %v611_v0 = vmax.f32 %v574_v57, 0.0 }
 0x10c   : > { %v526_v58 = vpop.f32.mrf.mxu0 }
 0x10d   : > { %v527_v59 = vadd.f32 %v526_v58, %v1648_v12  ;;  %v575_v60 = vpop.f32.mrf.mxu1 }
 0x10e   : > { %v576_v61 = vadd.f32 %v575_v60, %v1650_v13 }
 0x10f   : > { %v612_v63 = vmax.f32 %v527_v59, 0.0 }
 0x110   : > { %v613_v1 = vmax.f32 %v576_v61, 0.0 }
 0x111   : > { %v636_v2 = vpack.c.bf16 %v612_v63, %v610_v62  ;;  %v1687_v62 = vld [vmem:[%s1755_s4] ss:$0 sm:$0xff] }
 0x112   : > { %v637_v3 = vpack.c.bf16 %v613_v1, %v611_v0 }
 0x113   : > { %801 = vmatmul.bf16.gmra.mxu2 %v636_v2 }
 0x114   : > { %850 = vmatmul.bf16.gmra.mxu3 %v637_v3  ;;  %v529_v4 = vpop.f32.mrf.mxu0 }
 0x115   : > { %v578_v5 = vpop.f32.mrf.mxu1  ;;  %v530_v6 = vadd.f32 %v529_v4, %v1648_v12 }
 0x116   : > { %v579_v7 = vadd.f32 %v578_v5, %v1650_v13 }
 0x117   : > { %v614_v14 = vmax.f32 %v530_v6, 0.0 }
 0x118   : > { %v615_v16 = vmax.f32 %v579_v7, 0.0 }
 0x11c   : > { %v531_v8 = vpop.f32.mrf.mxu0 }
 0x11d   : > { %v532_v9 = vadd.f32 %v531_v8, %v1648_v12  ;;  %v580_v10 = vpop.f32.mrf.mxu1 }
 0x11e   : > { %v581_v11 = vadd.f32 %v580_v10, %v1650_v13 }
 0x11f   : > { %v616_v15 = vmax.f32 %v532_v9, 0.0 }
 0x120   : > { %v617_v17 = vmax.f32 %v581_v11, 0.0 }
 0x121   : > { %v638_v18 = vpack.c.bf16 %v616_v15, %v614_v14 }
 0x122   : > { %v639_v19 = vpack.c.bf16 %v617_v17, %v615_v16 }
 0x123   : > { %806 = vmatmul.bf16.gmra.mxu2 %v638_v18 }
 0x124   : > { %855 = vmatmul.bf16.gmra.mxu3 %v639_v19  ;;  %v534_v20 = vpop.f32.mrf.mxu0 }
 0x125   : > { %v583_v21 = vpop.f32.mrf.mxu1  ;;  %v535_v22 = vadd.f32 %v534_v20, %v1648_v12 }
 0x126   : > { %v584_v23 = vadd.f32 %v583_v21, %v1650_v13 }
 0x127   : > { %v618_v28 = vmax.f32 %v535_v22, 0.0 }
 0x128   : > { %v619_v30 = vmax.f32 %v584_v23, 0.0 }
 0x12c   : > { %v536_v24 = vpop.f32.mrf.mxu0 }
 0x12d   : > { %v537_v25 = vadd.f32 %v536_v24, %v1648_v12  ;;  %v585_v26 = vpop.f32.mrf.mxu1 }
 0x12e   : > { %v586_v27 = vadd.f32 %v585_v26, %v1650_v13 }
 0x12f   : > { %v620_v29 = vmax.f32 %v537_v25, 0.0 }
 0x130   : > { %v621_v31 = vmax.f32 %v586_v27, 0.0 }
 0x131   : > { %v640_v32 = vpack.c.bf16 %v620_v29, %v618_v28 }
 0x132   : > { %v641_v33 = vpack.c.bf16 %v621_v31, %v619_v30 }
 0x133   : > { %811 = vmatmul.bf16.gmra.mxu2 %v640_v32 }
 0x134   : > { %860 = vmatmul.bf16.gmra.mxu3 %v641_v33  ;;  %v539_v34 = vpop.f32.mrf.mxu0 }
 0x135   : > { %v588_v35 = vpop.f32.mrf.mxu1  ;;  %v540_v36 = vadd.f32 %v539_v34, %v1648_v12 }
 0x136   : > { %v589_v37 = vadd.f32 %v588_v35, %v1650_v13 }
 0x137   : > { %v622_v42 = vmax.f32 %v540_v36, 0.0 }
 0x138   : > { %v623_v44 = vmax.f32 %v589_v37, 0.0 }
 0x13c   : > { %v541_v38 = vpop.f32.mrf.mxu0 }
 0x13d   : > { %v542_v39 = vadd.f32 %v541_v38, %v1648_v12  ;;  %v590_v40 = vpop.f32.mrf.mxu1 }
 0x13e   : > { %v591_v41 = vadd.f32 %v590_v40, %v1650_v13 }
 0x13f   : > { %v624_v43 = vmax.f32 %v542_v39, 0.0 }
 0x140   : > { %v625_v45 = vmax.f32 %v591_v41, 0.0 }
 0x141   : > { %v642_v46 = vpack.c.bf16 %v624_v43, %v622_v42 }
 0x142   : > { %v643_v47 = vpack.c.bf16 %v625_v45, %v623_v44 }
 0x143   : > { %816 = vmatmul.bf16.gmra.mxu2 %v642_v46 }
 0x144   : > { %865 = vmatmul.bf16.gmra.mxu3 %v643_v47  ;;  %v544_v48 = vpop.f32.mrf.mxu0 }
 0x145   : > { %v593_v49 = vpop.f32.mrf.mxu1  ;;  %v545_v50 = vadd.f32 %v544_v48, %v1648_v12 }
 0x146   : > { %v594_v51 = vadd.f32 %v593_v49, %v1650_v13 }
 0x147   : > { %v626_v56 = vmax.f32 %v545_v50, 0.0 }
 0x148   : > { %v627_v58 = vmax.f32 %v594_v51, 0.0 }
 0x14c   : > { %v546_v52 = vpop.f32.mrf.mxu0 }
 0x14d   : > { %v547_v53 = vadd.f32 %v546_v52, %v1648_v12  ;;  %v595_v54 = vpop.f32.mrf.mxu1 }
 0x14e   : > { %v596_v55 = vadd.f32 %v595_v54, %v1650_v13 }
 0x14f   : > { %v628_v57 = vmax.f32 %v547_v53, 0.0 }
 0x150   : > { %v629_v59 = vmax.f32 %v596_v55, 0.0 }
 0x151   : > { %v644_v60 = vpack.c.bf16 %v628_v57, %v626_v56 }
 0x152   : > { %v645_v61 = vpack.c.bf16 %v629_v59, %v627_v58 }
 0x153   : > { %821 = vmatmul.bf16.gmra.mxu2 %v644_v60 }
 0x154   : > { %870 = vmatmul.bf16.gmra.mxu3 %v645_v61 }
 0x166   : > { %v787_v63 = vpop.f32.mrf.mxu2 }
 0x167   : > { %v788_v0 = vadd.f32 %v1687_v62, %v787_v63  ;;  %v836_v12 = vpop.f32.mrf.mxu3 }
 0x169   : > { %v837_v1 = vadd.f32 %v836_v12, %v788_v0 }
 0x16b   : > { %v876_v5 = vmax.f32 %v837_v1, 0.0 }
 0x16e   : > { %v789_v2 = vpop.f32.mrf.mxu2 }
 0x16f   : > { %v790_v13 = vadd.f32 %v1687_v62, %v789_v2  ;;  %v838_v3 = vpop.f32.mrf.mxu3 }
 0x171   : > { %v839_v4 = vadd.f32 %v838_v3, %v790_v13 }
 0x173   : > { %v877_v6 = vmax.f32 %v839_v4, 0.0 }
 0x175   : > { %v1691_v7 = vpack.c.bf16 %v877_v6, %v876_v5 }
 0x176   : > { %v792_v8 = vpop.f32.mrf.mxu2 }
 0x177   : > { %v793_v9 = vadd.f32 %v1687_v62, %v792_v8  ;;  %v841_v10 = vpop.f32.mrf.mxu3 }
 0x179   : > { %v842_v11 = vadd.f32 %v841_v10, %v793_v9 }
 0x17b   : > { %v878_v18 = vmax.f32 %v842_v11, 0.0 }
 0x17e   : > { %v794_v14 = vpop.f32.mrf.mxu2 }
 0x17f   : > { %v795_v15 = vadd.f32 %v1687_v62, %v794_v14  ;;  %v843_v16 = vpop.f32.mrf.mxu3 }
 0x181   : > { %v844_v17 = vadd.f32 %v843_v16, %v795_v15 }
 0x183   : > { %v879_v19 = vmax.f32 %v844_v17, 0.0 }
 0x185   : > { %v1695_v20 = vpack.c.bf16 %v879_v19, %v878_v18 }
 0x186   : > { %v797_v21 = vpop.f32.mrf.mxu2 }
 0x187   : > { %v798_v22 = vadd.f32 %v1687_v62, %v797_v21  ;;  %v846_v23 = vpop.f32.mrf.mxu3 }
 0x189   : > { %v847_v24 = vadd.f32 %v846_v23, %v798_v22 }
 0x18b   : > { %v880_v29 = vmax.f32 %v847_v24, 0.0 }
 0x18e   : > { %v799_v25 = vpop.f32.mrf.mxu2 }
 0x18f   : > { %v800_v26 = vadd.f32 %v1687_v62, %v799_v25  ;;  %v848_v27 = vpop.f32.mrf.mxu3 }
 0x191   : > { %v849_v28 = vadd.f32 %v848_v27, %v800_v26  ;;  %v901_v26 = vld [vmem:[#allocation2] sm:$0x1]  ;;  %v1477_v27 = vmov 0  }
 0x192   : > { %1307 = vset.pattern.permute.xlu0 %v1477_v27 }
 0x193   : > { %v881_v30 = vmax.f32 %v849_v28, 0.0  ;;  %904 = vperm.xlu0 %1307, %v901_v26  }
 0x195   : > { %v1699_v31 = vpack.c.bf16 %v881_v30, %v880_v29 }
 0x196   : > { %v802_v32 = vpop.f32.mrf.mxu2 }
 0x197   : > { %v803_v33 = vadd.f32 %v1687_v62, %v802_v32  ;;  %v851_v34 = vpop.f32.mrf.mxu3 }
 0x199   : > { %v852_v35 = vadd.f32 %v851_v34, %v803_v33 }
 0x19b   : > { %v882_v40 = vmax.f32 %v852_v35, 0.0 }
 0x19e   : > { %v804_v36 = vpop.f32.mrf.mxu2 }
 0x19f   : > { %v805_v37 = vadd.f32 %v1687_v62, %v804_v36  ;;  %v853_v38 = vpop.f32.mrf.mxu3 }
 0x1a1   : > { %v854_v39 = vadd.f32 %v853_v38, %v805_v37 }
 0x1a3   : > { %v883_v41 = vmax.f32 %v854_v39, 0.0 }
 0x1a5   : > { %v896_v42 = vpack.c.bf16 %v883_v41, %v882_v40 }
 0x1a6   : > { %v807_v43 = vpop.f32.mrf.mxu2 }
 0x1a7   : > { %v808_v44 = vadd.f32 %v1687_v62, %v807_v43  ;;  %v856_v45 = vpop.f32.mrf.mxu3 }
 0x1a9   : > { %v857_v46 = vadd.f32 %v856_v45, %v808_v44 }
 0x1ab   : > { %v884_v51 = vmax.f32 %v857_v46, 0.0 }
 0x1ae   : > { %v809_v47 = vpop.f32.mrf.mxu2 }
 0x1af   : > { %v810_v48 = vadd.f32 %v1687_v62, %v809_v47  ;;  %v858_v49 = vpop.f32.mrf.mxu3 }
 0x1b1   : > { %v859_v50 = vadd.f32 %v858_v49, %v810_v48 }
 0x1b3   : > { %v885_v52 = vmax.f32 %v859_v50, 0.0 }
 0x1b5   : > { %v897_v53 = vpack.c.bf16 %v885_v52, %v884_v51 }
 0x1b6   : > { %v812_v54 = vpop.f32.mrf.mxu2 }
 0x1b7   : > { %v861_v55 = vpop.f32.mrf.mxu3  ;;  %v813_v17 = vadd.f32 %v1687_v62, %v812_v54 }
 0x1b9   : > { %v862_v22 = vadd.f32 %v861_v55, %v813_v17 }
 0x1bb   : > { %v886_v24 = vmax.f32 %v862_v22, 0.0 }
 0x1be   : > { %v814_v56 = vpop.f32.mrf.mxu2 }
 0x1bf   : > { %v863_v57 = vpop.f32.mrf.mxu3  ;;  %v815_v15 = vadd.f32 %v1687_v62, %v814_v56 }
 0x1c1   : > { %v864_v19 = vadd.f32 %v863_v57, %v815_v15 }
 0x1c3   : > { %v887_v23 = vmax.f32 %v864_v19, 0.0 }
 0x1c5   : > { %v898_v25 = vpack.c.bf16 %v887_v23, %v886_v24 }
 0x1c6   : > { %v817_v58 = vpop.f32.mrf.mxu2 }
 0x1c7   : > { %v866_v59 = vpop.f32.mrf.mxu3  ;;  %v818_v6 = vadd.f32 %v1687_v62, %v817_v58 }
 0x1c9   : > { %v867_v14 = vadd.f32 %v866_v59, %v818_v6 }
 0x1cb   : > { %v888_v18 = vmax.f32 %v867_v14, 0.0 }
 0x1ce   : > { %v819_v60 = vpop.f32.mrf.mxu2 }
 0x1cf   : > { %v868_v61 = vpop.f32.mrf.mxu3  ;;  %v820_v4 = vadd.f32 %v1687_v62, %v819_v60 }
 0x1d1   : > { %v869_v10 = vadd.f32 %v868_v61, %v820_v4 }
 0x1d3   : > { %v889_v16 = vmax.f32 %v869_v10, 0.0 }
 0x1d5   : > { %v899_v21 = vpack.c.bf16 %v889_v16, %v888_v18 }
 0x1d6   : > { %v822_v63 = vpop.f32.mrf.mxu2 }
 0x1d7   : > { %v871_v0 = vpop.f32.mrf.mxu3  ;;  %v823_v12 = vadd.f32 %v1687_v62, %v822_v63 }
 0x1d9   : > { %v872_v2 = vadd.f32 %v871_v0, %v823_v12 }
 0x1db   : > { %v890_v8 = vmax.f32 %v872_v2, 0.0 }
 0x1de   : > { %v824_v1 = vpop.f32.mrf.mxu2 }
 0x1df   : > { %v825_v13 = vadd.f32 %v1687_v62, %v824_v1  ;;  %v873_v3 = vpop.f32.mrf.mxu3  ;;  %v892_v62 = vld [vmem:[%s1756_s5] sm:$0x1] }
 0x1e1   : > { %v874_v5 = vadd.f32 %v873_v3, %v825_v13 }
 0x1e3   : > { %v891_v9 = vmax.f32 %v874_v5, 0.0 }
 0x1e5   : > { %v900_v11 = vpack.c.bf16 %v891_v9, %v890_v8 }
 0x1e7   : > { %908 = vmatpush.bf16.xpose.msrb.mxu0 %v900_v11 }
 0x1ef   : > { %909 = vmatpush.bf16.xpose.msrb.mxu0 %v899_v21 }
 0x1f7   : > { %910 = vmatpush.bf16.xpose.msrb.mxu0 %v898_v25 }
 0x1ff   : > { %911 = vmatpush.bf16.xpose.msrb.mxu0 %v897_v53 }
 0x205   : > { %v905_v28 = vpop.permute.xlu0 %904 }
 0x206   : > { %v907_v29 = vperm.slane %v905_v28, 0 }
 0x207   : > { %912 = vmatpush.bf16.xpose.msrb.mxu0 %v896_v42 }
 0x20f   : > { %913 = vmatpush.bf16.xpose.msrb.mxu0 %v1699_v31 }
 0x217   : > { %914 = vmatpush.bf16.xpose.msrb.mxu0 %v1695_v20 }
 0x21f   : > { %915 = vmatpush.bf16.xpose.msrb.mxu0 %v1691_v7 }
 0x226   : > { %916 = vmatmul.bf16.vlgmr.msrb.gmra.mxu0 %v892_v62 }
 0x2a3   : > { %v917_v30 = vpop.f32.mrf.mxu0 }
 0x2a4   : > { %v918_v31 = vadd.f32 %v917_v30, %v907_v29 }
 0x2a6   : > { %921 = vst [vmem:[%s332_s14] sm:$0x1] %v918_v31 }
 0x2a7   : > { %1426 = shalt.err (!%p1423_p10)
}
 0x2a8   : > { %1245 = dma.vmem_to_hbm [thread:$0]  (%p1593_p5), %s934_s20, 16, %s936_s23, %s923_s24  }
 0x2ab   : > { %v919_v7 = vpop.f32.mrf.mxu0 }
 0x2ac PF: > { %s947_s16 = sand.u32 1, %s1457_s26   ;;  %p1768_p12 = scmp.ge.s32.totalorder %s1469_s29, 2 }
 0x2ad   : > { %s948_s10 = scalar_lea.sflag [#allocation5], %s947_s16 }
 0x2ae   : > { %p1259_p13 = pnand %p1768_p12, %p1556_p6 }
 0x2b0   : > { %p1260_p0 = pneg %p1259_p13 }
 0x2b2   : > { %1452 = dma.done.wait (%p1260_p0), %s948_s10, 16  }
 0x2b3   : > { %1454 = vsyncadd (%p1260_p0), %s948_s10, 4294967280  ;;  %p23_p3 = scmp.ge.s32.totalorder %s1580_s25, 4   ;;  %s1769_s26 = smov %s1461_s27 }
 0x2b4   : > { %s1770_s27 = smov %s1465_s28  ;;  %s1771_s28 = smov %s1589_s11 }
 0x2b5   : > { %s1772_s29 = smov %s1580_s25  ;;  %25 = sbr.rel (!%p23_p3) target bundleno = 9 (0x9), region = 101 }
 0x2ba   :  { %953 = vsyncpa [#allocation4], 1 }
 0x2bb   :  { %955 = vsyncpa [#allocation4 + $0x1], 1 }
 0x2bc   :  { %956 = vsyncpa [#allocation7], 1 }
 0x2bd   :  { %957 = vsyncpa [#allocation5], 1 }
 0x2be   :  { %959 = vsyncpa [#allocation5 + $0x1], 1 }

</bundles_post_ra>
